<compile_context>
chip_gen: v7x
topology: tpu7x:2x2x1
jax: 0.10.0
libtpu: 0.0.40
codegen_flags: <defaults>
</compile_context>

<pallas_src>
import math
from functools import partial

import jax
import jax.numpy as jnp
from jax.experimental import pallas as pl
from jax.experimental.pallas import tpu as pltpu


# ----------------------------------------------------------------------------
# In-kernel helper: shift rows by one within each length-H group, replicate
# padding at the group edges.  Uses an XLU sublane roll + a VPU edge fix-up.
# ----------------------------------------------------------------------------
def _replicate_shift(p, *, up, H):
    """up=False: result[r] = p[r-1] (clamped at h == 0)    -> dh = 0 tap
       up=True : result[r] = p[r+1] (clamped at h == H-1)  -> dh = 2 tap"""
    BH = p.shape[0]
    h = jax.lax.broadcasted_iota(jnp.int32, p.shape, 0) % H
    if up:
        rolled = pltpu.roll(p, shift=BH - 1, axis=0)   # r <- (r + 1) mod BH
        return jnp.where(h == H - 1, p, rolled)
    else:
        rolled = pltpu.roll(p, shift=1, axis=0)        # r <- (r - 1) mod BH
        return jnp.where(h == 0, p, rolled)


# ----------------------------------------------------------------------------
# Fused Pallas kernel: proj + Conv1(+BN+SiLU) + Conv2(+BN+SiLU) + residual add.
# All refs are 2D, lane-dense; no in-kernel reshapes / concats / 4D arrays.
# ----------------------------------------------------------------------------
def residual_kernel(x_ref, wc_ref, bc_ref, w2_ref, b2_ref, out_ref, *, H):
    WCout = out_ref.shape[-1]
    WCall = bc_ref.shape[-1]          # W * (Cmid + Cout)
    WCmid = WCall - WCout

    # Conv#1 (+ folded eval BN) and the projection DS2d share x -> one matmul
    # producing all three dh-tap partials side by side (dh-major columns),
    # then the replicate-padded H shift is done with sublane rolls.
    p = jnp.dot(x_ref[...], wc_ref[...], preferred_element_type=jnp.float32)
    y01 = (bc_ref[...]
           + _replicate_shift(p[:, :WCall], up=False, H=H)       # dh = 0 tap
           + p[:, WCall:2 * WCall]                                # dh = 1 tap
           + _replicate_shift(p[:, 2 * WCall:], up=True, H=H))    # dh = 2 tap
    # NOTE: this split is lane-aligned because W*Cmid == 128 in this config;
    # for other W/Cmid pad wrapper-side so the split stays on a 128 boundary.
    h1 = y01[:, :WCmid]               # conv1 pre-activation
    proj = y01[:, WCmid:]             # projection output (no BN / activation)
    h1 = h1 * pl.reciprocal(1.0 + jnp.exp(-h1), approx=True)     # SiLU (EUP recip)

    # Conv#2: identical matmul-then-shift structure.
    p2 = jnp.dot(h1, w2_ref[...], preferred_element_type=jnp.float32)
    y = (b2_ref[...]
         + _replicate_shift(p2[:, :WCout], up=False, H=H)
         + p2[:, WCout:2 * WCout]
         + _replicate_shift(p2[:, 2 * WCout:], up=True, H=H))
    y = y * pl.reciprocal(1.0 + jnp.exp(-y), approx=True)        # SiLU (EUP recip)
    out_ref[...] = y + proj                                      # fused residual add


# ----------------------------------------------------------------------------
# One-time wrapper-side folding (plain XLA, hoisted out of the forward path).
# ----------------------------------------------------------------------------
def _fold_ds2d_per_dh(ds2d, W, bn=None):
    """Fold DS2d (3x3 replicate-pad conv -> 1x1 conv) [+ eval BN] into three
    per-dh-tap matmul weights: W_dh[(w_src, ci), (w_out, co)] (width replicate
    padding folded in), plus a width-tiled bias row."""
    w3, b3, w1, b1 = ds2d              # (9,Cin,Cin), (Cin,), (Cin,Cout), (Cout,)
    Cin = w3.shape[1]
    Cout = w1.shape[1]
    w_eff = jnp.einsum('tic,co->tio', w3, w1, precision='highest')   # (9,Cin,Cout)
    b_eff = jnp.dot(b3, w1, precision='highest') + b1                # (Cout,)
    if bn is not None:                 # eval-mode BN folded into weights
        scale, shift = bn
        w_eff = w_eff * scale
        b_eff = b_eff * scale + shift
    w4 = w_eff.reshape(3, 3, Cin, Cout)                              # (dh,dw,ci,co)
    wq = jnp.arange(W)
    src = jnp.clip(wq[None, :] + jnp.arange(3)[:, None] - 1, 0, W - 1)   # (dw, q)
    sel = (src[:, :, None] == wq[None, None, :]).astype(jnp.float32)     # (dw,q,s)
    big = jnp.einsum('dqs,edio->esiqo', sel, w4, precision='highest')    # (dh,s,ci,q,co)
    w_dh = big.reshape(3, W * Cin, W * Cout)
    b_big = jnp.tile(b_eff, W).reshape(1, W * Cout)
    return w_dh, b_big


def fold_residual_params(params, W):
    """Precompute all lane-dense weight slabs ONCE; the jitted forward only
    consumes the result (no per-call einsums / concats / transposes)."""
    w1_dh, b1 = _fold_ds2d_per_dh(params['conv1'][:4], W, bn=params['conv1'][4:6])
    wp_dh, bp = _fold_ds2d_per_dh(params['proj'], W, bn=None)
    w2_dh, b2 = _fold_ds2d_per_dh(params['conv2'][:4], W, bn=params['conv2'][4:6])
    WCin = w1_dh.shape[1]
    WCmid = w1_dh.shape[2]
    WCout = wp_dh.shape[2]
    # conv1 and proj share the same input -> concat their weights column-wise,
    # then lay out the three dh taps dh-major along the columns.
    wc_dh = jnp.concatenate([w1_dh, wp_dh], axis=2)          # (3, WCin, WCmid+WCout)
    wc = jnp.transpose(wc_dh, (1, 0, 2)).reshape(WCin, 3 * (WCmid + WCout))
    bc = jnp.concatenate([b1, bp], axis=1)                   # (1, WCmid+WCout)
    w2 = jnp.transpose(w2_dh, (1, 0, 2)).reshape(WCmid, 3 * WCout)
    return {'wc': wc, 'bc': bc, 'w2': w2, 'b2': b2}


# ----------------------------------------------------------------------------
# Residual.forward:  block(x) + proj(x)
#   block = Conv(in, mid) -> Conv(mid, out)   with Conv = DS2d + BN + SiLU
#   proj  = DS2d(in, out)                     (in_ch != out_ch here)
# ----------------------------------------------------------------------------
def residual_forward(x_nchw, folded):
    B, Cin, H, W = x_nchw.shape
    BH = B * H
    WCout = folded['b2'].shape[1]
    # NCHW -> lane-dense 2D (row = (b,h), col = (w,c)); layout plumbing only.
    x2d = jnp.transpose(x_nchw, (0, 2, 3, 1)).reshape(BH, W * Cin)

    vmem = lambda: pl.BlockSpec(memory_space=pltpu.MemorySpace.VMEM)
    out2d = pl.pallas_call(
        partial(residual_kernel, H=H),
        out_shape=jax.ShapeDtypeStruct((BH, WCout), jnp.float32),
        in_specs=[vmem() for _ in range(5)],
        out_specs=vmem(),
    )(x2d, folded['wc'], folded['bc'], folded['w2'], folded['b2'])

    out = out2d.reshape(B, H, W, WCout // W)                 # lane-dense -> NHWC
    return jnp.transpose(out, (0, 3, 1, 2))                  # NHWC -> NCHW


# ----------------------------------------------------------------------------
# Deterministic parameter initialization (PyTorch-like Conv2d default init).
# ----------------------------------------------------------------------------
def _conv2d_init(key, cin, cout, k):
    wkey, bkey = jax.random.split(key)
    fan_in = cin * k * k
    bound = 1.0 / math.sqrt(fan_in)
    w = jax.random.uniform(wkey, (cout, cin, k, k), jnp.float32, -bound, bound)  # OIHW
    b = jax.random.uniform(bkey, (cout,), jnp.float32, -bound, bound)
    return w, b


def _ds2d_params(key, cin, cout):
    k1, k2 = jax.random.split(key)
    w3_oihw, b3 = _conv2d_init(k1, cin, cin, 3)
    w1_oihw, b1 = _conv2d_init(k2, cin, cout, 1)
    w3 = jnp.transpose(w3_oihw, (2, 3, 1, 0)).reshape(9, cin, cin)   # (tap, in, out)
    w1 = jnp.transpose(w1_oihw[:, :, 0, 0], (1, 0))                  # (in, out)
    return w3, b3, w1, b1


def _bn_params(key, c, eps=1e-5):
    k1, k2, k3, k4 = jax.random.split(key, 4)
    gamma = jax.random.uniform(k1, (c,), jnp.float32, 0.9, 1.1)
    beta = jax.random.uniform(k2, (c,), jnp.float32, -0.1, 0.1)
    rmean = jax.random.uniform(k3, (c,), jnp.float32, -0.1, 0.1)
    rvar = jax.random.uniform(k4, (c,), jnp.float32, 0.5, 1.5)
    scale = gamma / jnp.sqrt(rvar + eps)
    shift = beta - rmean * scale
    return scale, shift


# ----------------------------------------------------------------------------
# Pure-JAX reference (unfolded math, high precision) for correctness check.
# ----------------------------------------------------------------------------
def _ref_ds2d(x, p):
    w3, b3, w1, b1 = p[:4]
    B, H, W, Cin = x.shape
    xp = jnp.pad(x, ((0, 0), (1, 1), (1, 1), (0, 0)), mode='edge')
    y = jnp.zeros((B, H, W, Cin), jnp.float32)
    for t in range(9):
        dh, dw = t // 3, t % 3
        y = y + jnp.einsum('bhwi,io->bhwo', xp[:, dh:dh + H, dw:dw + W, :],
                           w3[t], precision='highest')
    y = y + b3
    return jnp.einsum('bhwi,io->bhwo', y, w1, precision='highest') + b1


def _ref_conv(x, p):
    y = _ref_ds2d(x, p)
    y = y * p[4] + p[5]
    return y * jax.nn.sigmoid(y)


def residual_reference(x_nchw, params):
    x = jnp.transpose(x_nchw, (0, 2, 3, 1))
    blk = _ref_conv(_ref_conv(x, params['conv1']), params['conv2'])
    prj = _ref_ds2d(x, params['proj'])
    return jnp.transpose(blk + prj, (0, 3, 1, 2))


if __name__ == "__main__":
    B, Cin, Cout, H, W = 2, 4, 8, 16, 16
    mid = Cout  # TwoConv default: mid_ch = out_ch

    key = jax.random.PRNGKey(0)
    kx, k1, k2, k3, k4, k5 = jax.random.split(key, 6)

    x = jax.random.normal(kx, (B, Cin, H, W), jnp.float32)   # PyTorch NCHW input

    params = {
        'conv1': _ds2d_params(k1, Cin, mid) + _bn_params(k2, mid),
        'conv2': _ds2d_params(k3, mid, Cout) + _bn_params(k4, Cout),
        'proj':  _ds2d_params(k5, Cin, Cout),
    }

    # One-time parameter folding, hoisted out of the jitted forward path.
    folded = jax.tree_util.tree_map(jnp.asarray, fold_residual_params(params, W))

    fwd = jax.jit(residual_forward)
    out = jax.block_until_ready(fwd(x, folded))
    ref = jax.block_until_ready(residual_reference(x, params))

    assert out.shape == (B, Cout, H, W), out.shape
    max_err = float(jnp.max(jnp.abs(out - ref)))
    # SiLU uses the approximate EUP reciprocal -> slightly looser tolerance
    # than an exact-f32 path.
    assert jnp.allclose(out, ref, atol=5e-3, rtol=5e-3), max_err
    print("KERNEL_OK")
</pallas_src>

<mosaic_0001>
module attributes {stable_mosaic.version = 11 : i64} {
  func.func @residual_kernel(%arg0: memref<32x64xf32, #tpu.memory_space<vmem>>, %arg1: memref<64x768xf32, #tpu.memory_space<vmem>>, %arg2: memref<1x256xf32, #tpu.memory_space<vmem>>, %arg3: memref<128x384xf32, #tpu.memory_space<vmem>>, %arg4: memref<1x128xf32, #tpu.memory_space<vmem>>, %arg5: memref<32x128xf32, #tpu.memory_space<vmem>>) attributes {dimension_semantics = [], scalar_prefetch = 0 : i64, scratch_operands = 0 : i64, tpu.core_type = #tpu.core_type<tc>} {
    %c0 = arith.constant 0 : index
    %c0_0 = arith.constant 0 : index
    %0 = vector.load %arg0[%c0, %c0_0] : memref<32x64xf32, #tpu.memory_space<vmem>>, vector<32x64xf32>
    %c0_1 = arith.constant 0 : index
    %c0_2 = arith.constant 0 : index
    %1 = vector.load %arg1[%c0_1, %c0_2] : memref<64x768xf32, #tpu.memory_space<vmem>>, vector<64x768xf32>
    %cst = arith.constant dense<0.000000e+00> : vector<32x768xf32>
    %2 = tpu.matmul %0, %1, %cst {dimension_numbers = #tpu.dot_dimension_numbers<[1], [0], [0], [1], [0, 0, 1, 1], [], []>} : vector<32x64xf32>, vector<64x768xf32>, vector<32x768xf32> -> vector<32x768xf32>
    %c0_3 = arith.constant 0 : index
    %c0_4 = arith.constant 0 : index
    %3 = vector.load %arg2[%c0_3, %c0_4] : memref<1x256xf32, #tpu.memory_space<vmem>>, vector<1x256xf32>
    %4 = vector.extract_strided_slice %2 {offsets = [0, 0], sizes = [32, 256], strides = [1, 1]} : vector<32x768xf32> to vector<32x256xf32>
    %5 = tpu.iota {dimensions = array<i32: 0>} : vector<32x256xi32>
    %c16_i32 = arith.constant 16 : i32
    %c0_i32 = arith.constant 0 : i32
    %6 = arith.cmpi eq, %c16_i32, %c0_i32 : i32
    %c1_i32 = arith.constant 1 : i32
    %7 = arith.select %6, %c1_i32, %c16_i32 : i32
    %8 = vector.broadcast %7 : i32 to vector<32x256xi32>
    %9 = arith.remsi %5, %8 : vector<32x256xi32>
    %c0_i32_5 = arith.constant 0 : i32
    %10 = vector.broadcast %c0_i32_5 : i32 to vector<32x256xi32>
    %11 = arith.cmpi ne, %9, %10 : vector<32x256xi32>
    %c0_i32_6 = arith.constant 0 : i32
    %12 = vector.broadcast %c0_i32_6 : i32 to vector<32x256xi32>
    %13 = arith.cmpi slt, %9, %12 : vector<32x256xi32>
    %c0_i32_7 = arith.constant 0 : i32
    %14 = arith.cmpi slt, %7, %c0_i32_7 : i32
    %15 = vector.broadcast %14 : i1 to vector<32x256xi1>
    %16 = vector.broadcast %15 : vector<32x256xi1> to vector<32x256xi1>
    %17 = arith.xori %13, %16 : vector<32x256xi1>
    %18 = arith.andi %17, %11 : vector<32x256xi1>
    %19 = vector.broadcast %7 : i32 to vector<32x256xi32>
    %20 = arith.addi %9, %19 : vector<32x256xi32>
    %21 = arith.select %18, %20, %9 : vector<32x256xi1>, vector<32x256xi32>
    %c1_i32_8 = arith.constant 1 : i32
    %22 = tpu.dynamic_rotate %4 by %c1_i32_8 dim 0 : vector<32x256xf32>, i32 -> vector<32x256xf32>
    %c0_i32_9 = arith.constant 0 : i32
    %23 = vector.broadcast %c0_i32_9 : i32 to vector<32x256xi32>
    %24 = arith.cmpi eq, %21, %23 : vector<32x256xi32>
    %25 = arith.select %24, %4, %22 : vector<32x256xi1>, vector<32x256xf32>
    %26 = vector.broadcast %3 : vector<1x256xf32> to vector<32x256xf32>
    %27 = arith.addf %26, %25 : vector<32x256xf32>
    %28 = vector.extract_strided_slice %2 {offsets = [0, 256], sizes = [32, 256], strides = [1, 1]} : vector<32x768xf32> to vector<32x256xf32>
    %29 = arith.addf %27, %28 : vector<32x256xf32>
    %30 = vector.extract_strided_slice %2 {offsets = [0, 512], sizes = [32, 256], strides = [1, 1]} : vector<32x768xf32> to vector<32x256xf32>
    %31 = tpu.iota {dimensions = array<i32: 0>} : vector<32x256xi32>
    %c16_i32_10 = arith.constant 16 : i32
    %c0_i32_11 = arith.constant 0 : i32
    %32 = arith.cmpi eq, %c16_i32_10, %c0_i32_11 : i32
    %c1_i32_12 = arith.constant 1 : i32
    %33 = arith.select %32, %c1_i32_12, %c16_i32_10 : i32
    %34 = vector.broadcast %33 : i32 to vector<32x256xi32>
    %35 = arith.remsi %31, %34 : vector<32x256xi32>
    %c0_i32_13 = arith.constant 0 : i32
    %36 = vector.broadcast %c0_i32_13 : i32 to vector<32x256xi32>
    %37 = arith.cmpi ne, %35, %36 : vector<32x256xi32>
    %c0_i32_14 = arith.constant 0 : i32
    %38 = vector.broadcast %c0_i32_14 : i32 to vector<32x256xi32>
    %39 = arith.cmpi slt, %35, %38 : vector<32x256xi32>
    %c0_i32_15 = arith.constant 0 : i32
    %40 = arith.cmpi slt, %33, %c0_i32_15 : i32
    %41 = vector.broadcast %40 : i1 to vector<32x256xi1>
    %42 = vector.broadcast %41 : vector<32x256xi1> to vector<32x256xi1>
    %43 = arith.xori %39, %42 : vector<32x256xi1>
    %44 = arith.andi %43, %37 : vector<32x256xi1>
    %45 = vector.broadcast %33 : i32 to vector<32x256xi32>
    %46 = arith.addi %35, %45 : vector<32x256xi32>
    %47 = arith.select %44, %46, %35 : vector<32x256xi1>, vector<32x256xi32>
    %c31_i32 = arith.constant 31 : i32
    %48 = tpu.dynamic_rotate %30 by %c31_i32 dim 0 : vector<32x256xf32>, i32 -> vector<32x256xf32>
    %c15_i32 = arith.constant 15 : i32
    %49 = vector.broadcast %c15_i32 : i32 to vector<32x256xi32>
    %50 = arith.cmpi eq, %47, %49 : vector<32x256xi32>
    %51 = arith.select %50, %30, %48 : vector<32x256xi1>, vector<32x256xf32>
    %52 = arith.addf %29, %51 : vector<32x256xf32>
    %53 = vector.extract_strided_slice %52 {offsets = [0, 0], sizes = [32, 128], strides = [1, 1]} : vector<32x256xf32> to vector<32x128xf32>
    %54 = vector.extract_strided_slice %52 {offsets = [0, 128], sizes = [32, 128], strides = [1, 1]} : vector<32x256xf32> to vector<32x128xf32>
    %cst_16 = arith.constant 0.000000e+00 : f32
    %55 = vector.broadcast %cst_16 : f32 to vector<32x128xf32>
    %56 = arith.subf %55, %53 : vector<32x128xf32>
    %57 = math.exp %56 : vector<32x128xf32>
    %cst_17 = arith.constant 1.000000e+00 : f32
    %58 = vector.broadcast %cst_17 : f32 to vector<32x128xf32>
    %59 = arith.addf %58, %57 : vector<32x128xf32>
    %60 = tpu.reciprocal %59 {approx = true} : vector<32x128xf32> -> vector<32x128xf32>
    %61 = arith.mulf %53, %60 : vector<32x128xf32>
    %c0_18 = arith.constant 0 : index
    %c0_19 = arith.constant 0 : index
    %62 = vector.load %arg3[%c0_18, %c0_19] : memref<128x384xf32, #tpu.memory_space<vmem>>, vector<128x384xf32>
    %cst_20 = arith.constant dense<0.000000e+00> : vector<32x384xf32>
    %63 = tpu.matmul %61, %62, %cst_20 {dimension_numbers = #tpu.dot_dimension_numbers<[1], [0], [0], [1], [0, 0, 1, 1], [], []>} : vector<32x128xf32>, vector<128x384xf32>, vector<32x384xf32> -> vector<32x384xf32>
    %c0_21 = arith.constant 0 : index
    %c0_22 = arith.constant 0 : index
    %64 = vector.load %arg4[%c0_21, %c0_22] : memref<1x128xf32, #tpu.memory_space<vmem>>, vector<1x128xf32>
    %65 = vector.extract_strided_slice %63 {offsets = [0, 0], sizes = [32, 128], strides = [1, 1]} : vector<32x384xf32> to vector<32x128xf32>
    %66 = tpu.iota {dimensions = array<i32: 0>} : vector<32x128xi32>
    %c16_i32_23 = arith.constant 16 : i32
    %c0_i32_24 = arith.constant 0 : i32
    %67 = arith.cmpi eq, %c16_i32_23, %c0_i32_24 : i32
    %c1_i32_25 = arith.constant 1 : i32
    %68 = arith.select %67, %c1_i32_25, %c16_i32_23 : i32
    %69 = vector.broadcast %68 : i32 to vector<32x128xi32>
    %70 = arith.remsi %66, %69 : vector<32x128xi32>
    %c0_i32_26 = arith.constant 0 : i32
    %71 = vector.broadcast %c0_i32_26 : i32 to vector<32x128xi32>
    %72 = arith.cmpi ne, %70, %71 : vector<32x128xi32>
    %c0_i32_27 = arith.constant 0 : i32
    %73 = vector.broadcast %c0_i32_27 : i32 to vector<32x128xi32>
    %74 = arith.cmpi slt, %70, %73 : vector<32x128xi32>
    %c0_i32_28 = arith.constant 0 : i32
    %75 = arith.cmpi slt, %68, %c0_i32_28 : i32
    %76 = vector.broadcast %75 : i1 to vector<32x128xi1>
    %77 = vector.broadcast %76 : vector<32x128xi1> to vector<32x128xi1>
    %78 = arith.xori %74, %77 : vector<32x128xi1>
    %79 = arith.andi %78, %72 : vector<32x128xi1>
    %80 = vector.broadcast %68 : i32 to vector<32x128xi32>
    %81 = arith.addi %70, %80 : vector<32x128xi32>
    %82 = arith.select %79, %81, %70 : vector<32x128xi1>, vector<32x128xi32>
    %c1_i32_29 = arith.constant 1 : i32
    %83 = tpu.dynamic_rotate %65 by %c1_i32_29 dim 0 : vector<32x128xf32>, i32 -> vector<32x128xf32>
    %c0_i32_30 = arith.constant 0 : i32
    %84 = vector.broadcast %c0_i32_30 : i32 to vector<32x128xi32>
    %85 = arith.cmpi eq, %82, %84 : vector<32x128xi32>
    %86 = arith.select %85, %65, %83 : vector<32x128xi1>, vector<32x128xf32>
    %87 = vector.broadcast %64 : vector<1x128xf32> to vector<32x128xf32>
    %88 = arith.addf %87, %86 : vector<32x128xf32>
    %89 = vector.extract_strided_slice %63 {offsets = [0, 128], sizes = [32, 128], strides = [1, 1]} : vector<32x384xf32> to vector<32x128xf32>
    %90 = arith.addf %88, %89 : vector<32x128xf32>
    %91 = vector.extract_strided_slice %63 {offsets = [0, 256], sizes = [32, 128], strides = [1, 1]} : vector<32x384xf32> to vector<32x128xf32>
    %92 = tpu.iota {dimensions = array<i32: 0>} : vector<32x128xi32>
    %c16_i32_31 = arith.constant 16 : i32
    %c0_i32_32 = arith.constant 0 : i32
    %93 = arith.cmpi eq, %c16_i32_31, %c0_i32_32 : i32
    %c1_i32_33 = arith.constant 1 : i32
    %94 = arith.select %93, %c1_i32_33, %c16_i32_31 : i32
    %95 = vector.broadcast %94 : i32 to vector<32x128xi32>
    %96 = arith.remsi %92, %95 : vector<32x128xi32>
    %c0_i32_34 = arith.constant 0 : i32
    %97 = vector.broadcast %c0_i32_34 : i32 to vector<32x128xi32>
    %98 = arith.cmpi ne, %96, %97 : vector<32x128xi32>
    %c0_i32_35 = arith.constant 0 : i32
    %99 = vector.broadcast %c0_i32_35 : i32 to vector<32x128xi32>
    %100 = arith.cmpi slt, %96, %99 : vector<32x128xi32>
    %c0_i32_36 = arith.constant 0 : i32
    %101 = arith.cmpi slt, %94, %c0_i32_36 : i32
    %102 = vector.broadcast %101 : i1 to vector<32x128xi1>
    %103 = vector.broadcast %102 : vector<32x128xi1> to vector<32x128xi1>
    %104 = arith.xori %100, %103 : vector<32x128xi1>
    %105 = arith.andi %104, %98 : vector<32x128xi1>
    %106 = vector.broadcast %94 : i32 to vector<32x128xi32>
    %107 = arith.addi %96, %106 : vector<32x128xi32>
    %108 = arith.select %105, %107, %96 : vector<32x128xi1>, vector<32x128xi32>
    %c31_i32_37 = arith.constant 31 : i32
    %109 = tpu.dynamic_rotate %91 by %c31_i32_37 dim 0 : vector<32x128xf32>, i32 -> vector<32x128xf32>
    %c15_i32_38 = arith.constant 15 : i32
    %110 = vector.broadcast %c15_i32_38 : i32 to vector<32x128xi32>
    %111 = arith.cmpi eq, %108, %110 : vector<32x128xi32>
    %112 = arith.select %111, %91, %109 : vector<32x128xi1>, vector<32x128xf32>
    %113 = arith.addf %90, %112 : vector<32x128xf32>
    %cst_39 = arith.constant 0.000000e+00 : f32
    %114 = vector.broadcast %cst_39 : f32 to vector<32x128xf32>
    %115 = arith.subf %114, %113 : vector<32x128xf32>
    %116 = math.exp %115 : vector<32x128xf32>
    %cst_40 = arith.constant 1.000000e+00 : f32
    %117 = vector.broadcast %cst_40 : f32 to vector<32x128xf32>
    %118 = arith.addf %117, %116 : vector<32x128xf32>
    %119 = tpu.reciprocal %118 {approx = true} : vector<32x128xf32> -> vector<32x128xf32>
    %120 = arith.mulf %113, %119 : vector<32x128xf32>
    %121 = arith.addf %120, %54 : vector<32x128xf32>
    %c0_41 = arith.constant 0 : index
    %c0_42 = arith.constant 0 : index
    %122 = vector.load %arg5[%c0_41, %c0_42] : memref<32x128xf32, #tpu.memory_space<vmem>>, vector<32x128xf32>
    tpu.vector_store %arg5[%c0_41, %c0_42], %121 {strides = array<i32>} : memref<32x128xf32, #tpu.memory_space<vmem>>, vector<32x128xf32>,
    return
  }
}

</mosaic_0001>

<bundles_post_ra>
// kernel: residual_forward.1
= control target key start
LH: loop header
LB: loop body
LE: loop exit
PB: predicated region body
PF: predicated region fallthrough
CT: control target
= control target key end

     0   :  { %10 = vsyncpa [#allocation3], 0  ;;  %s1082_s18 = smov [#allocation2]   ;;  %s1456_s0 = inlined_call_operand.vmem [shape: f32[32,64], index: 0, kind: input, shape index: {}]   ;;  %s1457_s1 = inlined_call_operand.vmem [shape: f32[64,768], index: 1, kind: input, shape index: {}]   ;;  %s1458_s2 = inlined_call_operand.vmem [shape: f32[1,256], index: 2, kind: input, shape index: {}]   ;;  %s1459_s3 = inlined_call_operand.hbm [shape: f32[128,384], index: 3, kind: input, shape index: {}]   ;;  %s1460_s4 = inlined_call_operand.vmem [shape: f32[1,128], index: 4, kind: input, shape index: {}]   ;;  %s1461_s5 = inlined_call_operand.vmem [shape: f32[32,128], index: 5, kind: output, shape index: {}]  }
   0x1   :  { %s22_s19 = sshll.u32 %s1082_s18, 4  ;;  %s1058_s22 = scalar_lea.hbm %s1459_s3, 6144  ;;  %s23_s19 = int_to_ptr.vmem [resolvable:$true] %s22_s19 }
   0x2   :  { %p1059_p0 = scmp.ne.s32.totalorder %s1459_s3, %s1058_s22  ;;  %p1062_p1 = scmp.lt.u32.totalorder %s1058_s22, %s1459_s3 }
   0x4   :  { %p1064_p2 = pnand %p1062_p1, %p1059_p0 }
   0x6   :  { %1067 = shalt.err (!%p1064_p2)
}
   0x7   :  { %s1068_s27 = scalar_lea.vmem %s23_s19, 6144  ;;  %p1073_p4 = scmp.lt.s32.totalorder %s23_s19, %s23_s19 }
   0x8   :  { %p1069_p3 = scmp.ne.s32.totalorder %s23_s19, %s1068_s27  ;;  %p1074_p5 = scmp.lt.s32.totalorder %s1068_s27, %s1068_s27 }
   0xa   :  { %p1075_p6 = por %p1074_p5, %p1073_p4 }
   0xc   :  { %p1076_p7 = pnand %p1075_p6, %p1069_p3 }
   0xe   :  { %1079 = shalt.err (!%p1076_p7)
}
   0xf   :  { %s1083_s28 = smov 384   ;;  %s1084_s29 = smov 24  }
  0x10   :  { %28 = dma.hbm_to_vmem [thread:$0]  %s1459_s3, 6144, %s23_s19, [#allocation3], %s1083_s28, %s1083_s28, %s1084_s29  }
  0x11   :  { %1080 = dma.done.wait [#allocation3], 6144  }
  0x12   :  { %1081 = vsyncadd [#allocation3], 4294961152  ;;  %v1085_v0 = vmov 0.0   ;;  %v39_v1 = vld [vmem:[%s1457_s1 + $0x8] sm:$0xff]  ;;  %v45_v2 = vld [vmem:[%s1457_s1 + $0x38] sm:$0xff]  ;;  %vm86_vm0 = vcmask 523264  }
  0x13   :  { %163 = vmatprep.mubr.f32.mxu0 %v1085_v0  ;;  %252 = vmatprep.mubr.f32.mxu1 %v1085_v0  ;;  %v38_v3 = vld [vmem:[%s1457_s1] sm:$0xff]  ;;  %v910_v4 = vpack.c.bf16 %v45_v2, %v39_v1  ;;  %v44_v5 = vld [vmem:[%s1457_s1 + $0x30] sm:$0xff]  ;;  %v51_v6 = vld [vmem:[%s1457_s1 + $0x68] sm:$0xff] }
  0x14   :  { %v57_v7 = vld [vmem:[%s1457_s1 + $0x98] sm:$0xff]  ;;  %v912_v8 = vpack.c.bf16 %v44_v5, %v38_v3  ;;  %v50_v10 = vld [vmem:[%s1457_s1 + $0x60] sm:$0xff]  ;;  %v56_v11 = vld [vmem:[%s1457_s1 + $0x90] sm:$0xff] }
  0x15   :  { %v914_v9 = vpack.c.bf16 %v57_v7, %v51_v6  ;;  %v41_v12 = vld [vmem:[%s1457_s1 + $0x18] sm:$0xff]  ;;  %911 = vmatprep.subr.bf16.mxu0 %v910_v4  ;;  %v47_v13 = vld [vmem:[%s1457_s1 + $0x48] sm:$0xff]  ;;  %v40_v14 = vld [vmem:[%s1457_s1 + $0x10] sm:$0xff]  ;;  %v916_v16 = vpack.c.bf16 %v56_v11, %v50_v10 }
  0x16   :  { %v46_v15 = vld [vmem:[%s1457_s1 + $0x40] sm:$0xff]  ;;  %913 = vmatpush1.bf16.msra.mxu0 %v912_v8  ;;  %v926_v17 = vpack.c.bf16 %v47_v13, %v41_v12  ;;  %v63_v19 = vld [vmem:[%s1457_s1 + $0xc8] sm:$0xff]  ;;  %v69_v20 = vld [vmem:[%s1457_s1 + $0xf8] sm:$0xff] }
  0x17   :  { %v928_v18 = vpack.c.bf16 %v46_v15, %v40_v14  ;;  %v62_v21 = vld [vmem:[%s1457_s1 + $0xc0] sm:$0xff]  ;;  %915 = vmatprep.subr.bf16.mxu0 %v914_v9  ;;  %v918_v22 = vpack.c.bf16 %v69_v20, %v63_v19  ;;  %v68_v23 = vld [vmem:[%s1457_s1 + $0xf0] sm:$0xff]  ;;  %v53_v24 = vld [vmem:[%s1457_s1 + $0x78] sm:$0xff]  ;;  %v367_v14 = vlaneseq }
  0x18   :  { %v59_v25 = vld [vmem:[%s1457_s1 + $0xa8] sm:$0xff]  ;;  %927 = vmatprep.subr.bf16.mxu1 %v926_v17  ;;  %v52_v27 = vld [vmem:[%s1457_s1 + $0x70] sm:$0xff]  ;;  %v58_v28 = vld [vmem:[%s1457_s1 + $0xa0] sm:$0xff]  ;;  %v920_v33 = vpack.c.bf16 %v68_v23, %v62_v21 }
  0x19   :  { %v930_v26 = vpack.c.bf16 %v59_v25, %v53_v24  ;;  %v75_v29 = vld [vmem:[%s1457_s1 + $0x128] sm:$0xff]  ;;  %929 = vmatpush1.bf16.msra.mxu1 %v928_v18  ;;  %v932_v30 = vpack.c.bf16 %v58_v28, %v52_v27  ;;  %v81_v31 = vld [vmem:[%s1457_s1 + $0x158] sm:$0xff]  ;;  %v74_v32 = vld [vmem:[%s1457_s1 + $0x120] sm:$0xff]  ;;  %v1309_v15 = vshrl.u32 %v367_v14, 7 }
  0x1a   :  { %917 = vmatpush1.bf16.msra.mxu0 %v916_v16  ;;  %v65_v34 = vld [vmem:[%s1457_s1 + $0xd8] sm:$0xff]  ;;  %v71_v35 = vld [vmem:[%s1457_s1 + $0x108] sm:$0xff]  ;;  %v64_v36 = vld [vmem:[%s1457_s1 + $0xd0] sm:$0xff]  ;;  %v922_v37 = vpack.c.bf16 %v81_v31, %v75_v29 }
  0x1b   :  { %931 = vmatprep.subr.bf16.mxu1 %v930_v26  ;;  %919 = vmatprep.subr.bf16.mxu0 %v918_v22  ;;  %v80_v38 = vld [vmem:[%s1457_s1 + $0x150] sm:$0xff]  ;;  %v934_v39 = vpack.c.bf16 %v71_v35, %v65_v34  ;;  %v70_v40 = vld [vmem:[%s1457_s1 + $0x100] sm:$0xff]  ;;  %v43_v41 = vld [vmem:[%s1457_s1 + $0x28] sm:$0xff]  ;;  %v456_v17 = vsub.s32 1, %v1309_v15  ;;  %vm428_vm1 = vcmp.lt.s32.totalorder %v1309_v15, 1  ;;  %vm484_vm4 = vcmp.lt.s32.totalorder %v1309_v15, 7 }
  0x1c   :  { %v49_v42 = vld [vmem:[%s1457_s1 + $0x58] sm:$0xff]  ;;  %v83_v44 = vld [vmem:[%s1457_s1 + $0x168] sm:$0xff]  ;;  %v936_v45 = vpack.c.bf16 %v70_v40, %v64_v36  ;;  %v924_v46 = vpack.c.bf16 %v80_v38, %v74_v32  ;;  %v76_v48 = vld [vmem:[%s1457_s1 + $0x130] sm:$0xff] }
  0x1d   :  { %v77_v43 = vld [vmem:[%s1457_s1 + $0x138] sm:$0xff]  ;;  %933 = vmatpush1.bf16.msra.mxu1 %v932_v30  ;;  %v82_v49 = vld [vmem:[%s1457_s1 + $0x160] sm:$0xff]  ;;  %v942_v50 = vpack.c.bf16 %v49_v42, %v43_v41  ;;  %v48_v52 = vld [vmem:[%s1457_s1 + $0x50] sm:$0xff] }
  0x1e   :  { %921 = vmatpush1.bf16.msra.mxu0 %v920_v33  ;;  %935 = vmatprep.subr.bf16.mxu1 %v934_v39  ;;  %v938_v47 = vpack.c.bf16 %v83_v44, %v77_v43  ;;  %v42_v51 = vld [vmem:[%s1457_s1 + $0x20] sm:$0xff]  ;;  %v55_v53 = vld [vmem:[%s1457_s1 + $0x88] sm:$0xff]  ;;  %v61_v54 = vld [vmem:[%s1457_s1 + $0xb8] sm:$0xff]  ;;  %v940_v55 = vpack.c.bf16 %v82_v49, %v76_v48 }
  0x1f   :  { %923 = vmatprep.subr.bf16.mxu0 %v922_v37  ;;  %v34_v56 = vld [vmem:[%s1456_s0] sm:$0xff]  ;;  %v944_v57 = vpack.c.bf16 %v48_v52, %v42_v51  ;;  %v946_v58 = vpack.c.bf16 %v61_v54, %v55_v53  ;;  %v60_v60 = vld [vmem:[%s1457_s1 + $0xb0] sm:$0xff]  ;;  %v67_v61 = vld [vmem:[%s1457_s1 + $0xe8] sm:$0xff] }
  0x20   :  { %v54_v59 = vld [vmem:[%s1457_s1 + $0x80] sm:$0xff]  ;;  %v73_v62 = vld [vmem:[%s1457_s1 + $0x118] sm:$0xff]  ;;  %v35_v63 = vld [vmem:[%s1456_s0 + $0x8] sm:$0xff] }
  0x21   :  { %937 = vmatpush1.bf16.msra.mxu1 %v936_v45  ;;  %v948_v1 = vpack.c.bf16 %v60_v60, %v54_v59  ;;  %v950_v2 = vpack.c.bf16 %v73_v62, %v67_v61  ;;  %v66_v3 = vld [vmem:[%s1457_s1 + $0xe0] sm:$0xff]  ;;  %v72_v4 = vld [vmem:[%s1457_s1 + $0x110] sm:$0xff]  ;;  %v79_v5 = vld [vmem:[%s1457_s1 + $0x148] sm:$0xff] }
  0x22   :  { %925 = vmatpush1.bf16.msra.mxu0 %v924_v46  ;;  %939 = vmatprep.subr.bf16.mxu1 %v938_v47  ;;  %v85_v6 = vld [vmem:[%s1457_s1 + $0x178] sm:$0xff]  ;;  %v36_v7 = vld [vmem:[%s1456_s0 + $0x10] sm:$0xff]  ;;  %v952_v8 = vpack.c.bf16 %v72_v4, %v66_v3  ;;  %v78_v10 = vld [vmem:[%s1457_s1 + $0x140] sm:$0xff] }
  0x23   :  { %943 = vmatprep.subr.bf16.mxu0 %v942_v50  ;;  %v954_v9 = vpack.c.bf16 %v85_v6, %v79_v5  ;;  %v84_v11 = vld [vmem:[%s1457_s1 + $0x170] sm:$0xff]  ;;  %v37_v12 = vld [vmem:[%s1456_s0 + $0x18] sm:$0xff]  ;;  %v1314_v16 = vld [vmem:[%s1458_s2] sm:$0x3] }
  0x24   :  { %v956_v13 = vpack.c.bf16 %v84_v11, %v78_v10  ;;  %v1318_v18 = vrot.slane %v1314_v16, %v456_v17  ;;  %v538_v19 = vld [vmem:[#allocation2 + $0x8] sm:$0xff]  ;;  %v541_v20 = vld [vmem:[#allocation2 + $0x20] sm:$0xff]  ;;  %v540_v23 = vld [vmem:[#allocation2 + $0x18] sm:$0xff] }
  0x25   :  { %839 = vmatmul.mubr.msk.f32.vlgmr.msra.gmra.mrb[0].mxu0 %vm86_vm0, %v34_v56  ;;  %941 = vmatpush1.bf16.msra.mxu1 %v940_v55  ;;  %v958_v21 = vpack.c.bf16 %v541_v20, %v538_v19  ;;  %v537_v22 = vld [vmem:[#allocation2] sm:$0xff]  ;;  %v544_v25 = vld [vmem:[#allocation2 + $0x38] sm:$0xff]  ;;  %v547_v26 = vld [vmem:[#allocation2 + $0x50] sm:$0xff] }
  0x26   :  { %945 = vmatpush1.bf16.msra.mxu0 %v944_v57  ;;  %169 = vmatprep.mubr.f32.mxu0 %v1085_v0  ;;  %v960_v24 = vpack.c.bf16 %v540_v23, %v537_v22  ;;  %v962_v27 = vpack.c.bf16 %v547_v26, %v544_v25  ;;  %v543_v28 = vld [vmem:[#allocation2 + $0x30] sm:$0xff]  ;;  %v546_v29 = vld [vmem:[#allocation2 + $0x48] sm:$0xff]  ;;  %v553_v35 = vld [vmem:[#allocation2 + $0x80] sm:$0xff] }
  0x27   :  { %947 = vmatprep.subr.bf16.mxu0 %v946_v58  ;;  %959 = vmatprep.subr.bf16.mxu1 %v958_v21  ;;  %v539_v30 = vld [vmem:[#allocation2 + $0x10] sm:$0xff]  ;;  %v964_v31 = vpack.c.bf16 %v546_v29, %v543_v28  ;;  %v542_v32 = vld [vmem:[#allocation2 + $0x28] sm:$0xff]  ;;  %v549_v37 = vld [vmem:[#allocation2 + $0x60] sm:$0xff] }
  0x28   :  { %843 = vmatmul.mubr.msk.f32.vlgmr.msra.gmra.mrb[0].mxu1 %vm86_vm0, %v34_v56  ;;  %v990_v33 = vpack.c.bf16 %v542_v32, %v539_v30  ;;  %v550_v34 = vld [vmem:[#allocation2 + $0x68] sm:$0xff]  ;;  %v552_v38 = vld [vmem:[#allocation2 + $0x78] sm:$0xff]  ;;  %v545_v39 = vld [vmem:[#allocation2 + $0x40] sm:$0xff]  ;;  %v452_v32 = vsub.s32 0, %v1309_v15 }
  0x29   :  { %840 = vmatmul.mubr.msk.f32.gmra.mrb[2].mxu0 %vm86_vm0, %v35_v63  ;;  %258 = vmatprep.mubr.f32.mxu1 %v1085_v0  ;;  %v966_v36 = vpack.c.bf16 %v553_v35, %v550_v34  ;;  %v968_v40 = vpack.c.bf16 %v552_v38, %v549_v37  ;;  %v548_v41 = vld [vmem:[#allocation2 + $0x58] sm:$0xff]  ;;  %v559_v44 = vld [vmem:[#allocation2 + $0xb0] sm:$0xff]  ;;  %v558_v47 = vld [vmem:[#allocation2 + $0xa8] sm:$0xff]  ;;  %v370_v34 = vadd.s32 16, %v1309_v15 }
  0x2a   :  { %949 = vmatpush1.bf16.msra.mxu0 %v948_v1  ;;  %175 = vmatprep.mubr.f32.mxu0 %v1085_v0  ;;  %v994_v42 = vpack.c.bf16 %v548_v41, %v545_v39  ;;  %v556_v43 = vld [vmem:[#allocation2 + $0x98] sm:$0xff]  ;;  %v555_v46 = vld [vmem:[#allocation2 + $0x90] sm:$0xff]  ;;  %v554_v50 = vld [vmem:[#allocation2 + $0x88] sm:$0xff]  ;;  %v453_v38 = vrot.slane %v1314_v16, %v452_v32 }
  0x2b   :  { %951 = vmatprep.subr.bf16.mxu0 %v950_v2  ;;  %961 = vmatpush1.bf16.msra.mxu1 %v960_v24  ;;  %v970_v45 = vpack.c.bf16 %v559_v44, %v556_v43  ;;  %v551_v48 = vld [vmem:[#allocation2 + $0x70] sm:$0xff]  ;;  %v972_v49 = vpack.c.bf16 %v558_v47, %v555_v46  ;;  %v562_v52 = vld [vmem:[#allocation2 + $0xc8] sm:$0xff]  ;;  %v565_v53 = vld [vmem:[#allocation2 + $0xe0] sm:$0xff] }
  0x2c   :  { %844 = vmatmul.mubr.msk.f32.gmra.mrb[2].mxu1 %vm86_vm0, %v35_v63  ;;  %963 = vmatprep.subr.bf16.mxu1 %v962_v27  ;;  %v998_v51 = vpack.c.bf16 %v554_v50, %v551_v48  ;;  %v974_v54 = vpack.c.bf16 %v565_v53, %v562_v52  ;;  %v561_v55 = vld [vmem:[#allocation2 + $0xc0] sm:$0xff]  ;;  %v560_v59 = vld [vmem:[#allocation2 + $0xb8] sm:$0xff]  ;;  %v571_v62 = vld [vmem:[#allocation2 + $0x110] sm:$0xff] }
  0x2d   :  { %841 = vmatmul.mubr.msk.f32.gmra.mrb[4].mxu0 %vm86_vm0, %v36_v7  ;;  %264 = vmatprep.mubr.f32.mxu1 %v1085_v0  ;;  %v557_v57 = vld [vmem:[#allocation2 + $0xa0] sm:$0xff]  ;;  %v568_v61 = vld [vmem:[#allocation2 + $0xf8] sm:$0xff]  ;;  %v567_v1 = vld [vmem:[#allocation2 + $0xf0] sm:$0xff] }
  0x2e   :  { %953 = vmatpush1.bf16.msra.mxu0 %v952_v8  ;;  %181 = vmatprep.mubr.f32.mxu0 %v1085_v0  ;;  %v1002_v60 = vpack.c.bf16 %v560_v59, %v557_v57  ;;  %v570_v2 = vld [vmem:[#allocation2 + $0x108] sm:$0xff]  ;;  %v563_v3 = vld [vmem:[#allocation2 + $0xd0] sm:$0xff]  ;;  %v577_v8 = vld [vmem:[#allocation2 + $0x140] sm:$0xff] }
  0x2f   :  { %955 = vmatprep.subr.bf16.mxu0 %v954_v9  ;;  %965 = vmatpush1.bf16.msra.mxu1 %v964_v31  ;;  %v980_v4 = vpack.c.bf16 %v570_v2, %v567_v1  ;;  %v566_v5 = vld [vmem:[#allocation2 + $0xe8] sm:$0xff]  ;;  %v573_v10 = vld [vmem:[#allocation2 + $0x120] sm:$0xff]  ;;  %v576_v11 = vld [vmem:[#allocation2 + $0x138] sm:$0xff] }
  0x30   :  { %845 = vmatmul.mubr.msk.f32.gmra.mrb[4].mxu1 %vm86_vm0, %v36_v7  ;;  %967 = vmatprep.subr.bf16.mxu1 %v966_v36  ;;  %v1006_v6 = vpack.c.bf16 %v566_v5, %v563_v3  ;;  %v572_v14 = vld [vmem:[#allocation2 + $0x118] sm:$0xff]  ;;  %v583_v20 = vld [vmem:[#allocation2 + $0x170] sm:$0xff]  ;;  %v582_v23 = vld [vmem:[#allocation2 + $0x168] sm:$0xff] }
  0x31   :  { %842 = vmatmul.mubr.msk.f32.gmra.mrb[6].mxu0 %vm86_vm0, %v37_v12  ;;  %270 = vmatprep.mubr.f32.mxu1 %v1085_v0  ;;  %v580_v19 = vld [vmem:[#allocation2 + $0x158] sm:$0xff]  ;;  %v579_v22 = vld [vmem:[#allocation2 + $0x150] sm:$0xff]  ;;  %v578_v26 = vld [vmem:[#allocation2 + $0x148] sm:$0xff] }
  0x32   :  { %957 = vmatpush1.bf16.msra.mxu0 %v956_v13  ;;  %341 = vmatprep.mubr.f32.mxu0 %v1085_v0  ;;  %v984_v13 = vpack.c.bf16 %v576_v11, %v573_v10  ;;  %v986_v21 = vpack.c.bf16 %v583_v20, %v580_v19  ;;  %v575_v24 = vld [vmem:[#allocation2 + $0x130] sm:$0xff]  ;;  %v988_v25 = vpack.c.bf16 %v582_v23, %v579_v22  ;;  %v581_v28 = vld [vmem:[#allocation2 + $0x160] sm:$0xff]  ;;  %v584_v29 = vld [vmem:[#allocation2 + $0x178] sm:$0xff] }
  0x33   :  { %991 = vmatprep.subr.bf16.mxu0 %v990_v33  ;;  %969 = vmatpush1.bf16.msra.mxu1 %v968_v40  ;;  %v1014_v27 = vpack.c.bf16 %v578_v26, %v575_v24  ;;  %v1018_v30 = vpack.c.bf16 %v584_v29, %v581_v28 }
  0x34   :  { %846 = vmatmul.mubr.msk.f32.gmra.mrb[6].mxu1 %vm86_vm0, %v37_v12  ;;  %971 = vmatprep.subr.bf16.mxu1 %v970_v45 }
  0x35   :  { %847 = vmatmul.mubr.msk.f32.vlgmr.msra.gmra.mrb[8].mxu0 %vm86_vm0, %v34_v56  ;;  %649 = vmatprep.mubr.f32.mxu1 %v1085_v0  ;;  %v564_v56 = vld [vmem:[#allocation2 + $0xd8] sm:$0xff] }
  0x36   :  { %347 = vmatprep.mubr.f32.mxu0 %v1085_v0  ;;  %993 = vmatpush3.bf16.msra.mxu0 %v990_v33  ;;  %v976_v58 = vpack.c.bf16 %v564_v56, %v561_v55 }
  0x37   :  { %995 = vmatprep.subr.bf16.mxu0 %v994_v42  ;;  %973 = vmatpush1.bf16.msra.mxu1 %v972_v49 }
  0x38   :  { %975 = vmatprep.subr.bf16.mxu1 %v974_v54  ;;  %v376_v54 = vand.u32 15, %v1309_v15 }
  0x39   :  { %848 = vmatmul.mubr.msk.f32.gmra.mrb[10].mxu0 %vm86_vm0, %v35_v63  ;;  %v978_v63 = vpack.c.bf16 %v571_v62, %v568_v61 }
  0x3a   :  { %353 = vmatprep.mubr.f32.mxu0 %v1085_v0  ;;  %997 = vmatpush3.bf16.msra.mxu0 %v994_v42  ;;  %v390_v42 = vand.u32 15, %v370_v34  ;;  %vm1346_vm3 = vcmp.eq.s32.totalorder %v376_v54, 0 }
  0x3b   :  { %999 = vmatprep.subr.bf16.mxu0 %v998_v51  ;;  %977 = vmatpush1.bf16.msra.mxu1 %v976_v58 }
  0x3c   :  { %979 = vmatprep.subr.bf16.mxu1 %v978_v63  ;;  %vm1328_vm2 = vcmp.eq.s32.totalorder %v390_v42, 0 }
  0x3d   :  { %849 = vmatmul.mubr.msk.f32.gmra.mrb[12].mxu0 %vm86_vm0, %v36_v7  ;;  %v574_v7 = vld [vmem:[#allocation2 + $0x128] sm:$0xff] }
  0x3e   :  { %359 = vmatprep.mubr.f32.mxu0 %v1085_v0  ;;  %1001 = vmatpush3.bf16.msra.mxu0 %v998_v51  ;;  %v982_v9 = vpack.c.bf16 %v577_v8, %v574_v7 }
  0x3f   :  { %1003 = vmatprep.subr.bf16.mxu0 %v1002_v60  ;;  %981 = vmatpush1.bf16.msra.mxu1 %v980_v4 }
  0x40   :  { %983 = vmatprep.subr.bf16.mxu1 %v982_v9 }
  0x41   :  { %850 = vmatmul.mubr.msk.f32.gmra.mrb[14].mxu0 %vm86_vm0, %v37_v12  ;;  %v569_v12 = vld [vmem:[#allocation2 + $0x100] sm:$0xff] }
  0x42   :  { %1005 = vmatpush3.bf16.msra.mxu0 %v1002_v60  ;;  %v1010_v17 = vpack.c.bf16 %v572_v14, %v569_v12 }
  0x43   :  { %1007 = vmatprep.subr.bf16.mxu0 %v1006_v6  ;;  %985 = vmatpush1.bf16.msra.mxu1 %v984_v13 }
  0x44   :  { %987 = vmatprep.subr.bf16.mxu1 %v986_v21 }
  0x46   :  { %1009 = vmatpush3.bf16.msra.mxu0 %v1006_v6 }
  0x47   :  { %1011 = vmatprep.subr.bf16.mxu0 %v1010_v17  ;;  %989 = vmatpush1.bf16.msra.mxu1 %v988_v25  ;;  %v369_v25 = vadd.s32 8, %v1309_v15 }
  0x4a   :  { %1013 = vmatpush3.bf16.msra.mxu0 %v1010_v17 }
  0x4b   :  { %1015 = vmatprep.subr.bf16.mxu0 %v1014_v27 }
  0x4e   :  { %1017 = vmatpush3.bf16.msra.mxu0 %v1014_v27 }
  0x4f   :  { %1019 = vmatprep.subr.bf16.mxu0 %v1018_v30 }
  0x52   :  { %1021 = vmatpush3.bf16.msra.mxu0 %v1018_v30 }
  0xf8   :  { %v165_v31 = vpop.f32.mrb[0].mxu0 }
  0xf9   :  { %v167_v33 = vpop.f32.mrb[1].mxu0  ;;  %v420_v39 = vrot.slane %v165_v31, 7 }
  0xfa   :  { %v421_v43 = vrot.slane %v167_v33, 7 }
  0xfb   :  { %v254_v35 = vpop.f32.mrb[0].mxu1 }
  0xfc   :  { %v171_v36 = vpop.f32.mrb[2].mxu0  ;;  %v256_v37 = vpop.f32.mrb[1].mxu1 }
  0xfd   :  { %v422_v40 = vrot.slane %v171_v36, 7  ;;  %v173_v41 = vpop.f32.mrb[3].mxu0 }
  0xfe   :  { %v423_v44 = vrot.slane %v173_v41, 7 }
  0xff   :  { %v260_v45 = vpop.f32.mrb[2].mxu1  ;;  %v433_v46 = vsel %vm428_vm1, %v420_v39, %v422_v40 }
 0x100   :  { %v177_v47 = vpop.f32.mrb[4].mxu0  ;;  %v462_v48 = vadd.f32 %v453_v38, %v433_v46  ;;  %v262_v49 = vpop.f32.mrb[3].mxu1  ;;  %v434_v50 = vsel %vm428_vm1, %v421_v43, %v423_v44 }
 0x101   :  { %v424_v51 = vrot.slane %v177_v47, 7  ;;  %v179_v16 = vpop.f32.mrb[5].mxu0  ;;  %v463_v53 = vadd.f32 %v1318_v18, %v434_v50 }
 0x102   :  { %v425_v55 = vrot.slane %v179_v16, 7  ;;  %v1334_v56 = vadd.f32 %v462_v48, %v260_v45 }
 0x103   :  { %v431_v57 = vsel %vm428_vm1, %v422_v40, %v424_v51  ;;  %v1338_v58 = vadd.f32 %v463_v53, %v262_v49  ;;  %v266_v59 = vpop.f32.mrb[4].mxu1 }
 0x104   :  { %v445_v60 = vsel %vm1328_vm2, %v177_v47, %v431_v57  ;;  %v432_v61 = vsel %vm428_vm1, %v423_v44, %v425_v55  ;;  %v183_v62 = vpop.f32.mrb[6].mxu0  ;;  %v268_v63 = vpop.f32.mrb[5].mxu1 }
 0x105   :  { %v446_v1 = vsel %vm1328_vm2, %v179_v16, %v432_v61  ;;  %v426_v2 = vrot.slane %v183_v62, 7  ;;  %v185_v4 = vpop.f32.mrb[7].mxu0  ;;  %v464_v5 = vadd.f32 %v453_v38, %v445_v60 }
 0x106   :  { %v427_v6 = vrot.slane %v185_v4, 7  ;;  %v465_v7 = vadd.f32 %v1318_v18, %v446_v1 }
 0x107   :  { %v435_v8 = vsel %vm428_vm1, %v426_v2, %v420_v39  ;;  %v472_v9 = vadd.f32 %v464_v5, %v266_v59  ;;  %v272_v10 = vpop.f32.mrb[6].mxu1  ;;  %v429_v11 = vsel %vm428_vm1, %v424_v51, %v426_v2  ;;  %v371_v39 = vadd.s32 24, %v1309_v15 }
 0x108   :  { %v441_v12 = vsel %vm1346_vm3, %v165_v31, %v435_v8  ;;  %v436_v13 = vsel %vm428_vm1, %v427_v6, %v421_v43  ;;  %v473_v14 = vadd.f32 %v465_v7, %v268_v63  ;;  %v343_v17 = vpop.f32.mrb[8].mxu0  ;;  %v466_v19 = vadd.f32 %v453_v38, %v429_v11  ;;  %v274_v20 = vpop.f32.mrb[7].mxu1 }
 0x109   :  { %v460_v21 = vadd.f32 %v453_v38, %v441_v12  ;;  %v442_v22 = vsel %vm1346_vm3, %v167_v33, %v436_v13  ;;  %v345_v23 = vpop.f32.mrb[9].mxu0  ;;  %v430_v24 = vsel %vm428_vm1, %v425_v55, %v427_v6  ;;  %v476_v34 = vrot.slane %v343_v17, 1 }
 0x10a   :  { %v461_v26 = vadd.f32 %v1318_v18, %v442_v22  ;;  %v474_v27 = vadd.f32 %v466_v19, %v272_v10  ;;  %v467_v28 = vadd.f32 %v1318_v18, %v430_v24  ;;  %v383_v38 = vand.u32 15, %v369_v25 }
 0x10b   :  { %v468_v29 = vadd.f32 %v460_v21, %v254_v35  ;;  %v477_v40 = vrot.slane %v345_v23, 1  ;;  %v397_v47 = vand.u32 15, %v371_v39 }
 0x10c   :  { %v475_v30 = vadd.f32 %v467_v28, %v274_v20  ;;  %v349_v31 = vpop.f32.mrb[10].mxu0  ;;  %v469_v32 = vadd.f32 %v461_v26, %v256_v37  ;;  %vm1374_vm5 = vcmp.eq.s32.totalorder %v383_v38, 15 }
 0x10d   :  { %v478_v36 = vrot.slane %v349_v31, 1  ;;  %v351_v33 = vpop.f32.mrb[11].mxu0  ;;  %vm1386_vm6 = vcmp.eq.s32.totalorder %v397_v47, 15 }
 0x10e   :  { %v479_v41 = vrot.slane %v351_v33, 1 }
 0x10f   :  { %v489_v42 = vsel %vm484_vm4, %v476_v34, %v478_v36 }
 0x110   :  { %v505_v43 = vadd.f32 %v489_v42, %v468_v29  ;;  %v490_v18 = vsel %vm484_vm4, %v477_v40, %v479_v41  ;;  %v355_v35 = vpop.f32.mrb[12].mxu0 }
 0x111   :  { %v1372_v44 = vadd.f32 %v490_v18, %v469_v32  ;;  %v480_v45 = vrot.slane %v355_v35, 1  ;;  %v357_v37 = vpop.f32.mrb[13].mxu0 }
 0x112   :  { %v513_v48 = vsub.f32 0.0, %v505_v43  ;;  %v481_v49 = vrot.slane %v357_v37, 1 }
 0x113   :  { %v487_v50 = vsel %vm484_vm4, %v478_v36, %v480_v45 }
 0x114   :  { %v517_v51 = vmul.f32 1.442695, %v513_v48  ;;  %v488_v16 = vsel %vm484_vm4, %v479_v41, %v481_v49  ;;  %v361_v53 = vpop.f32.mrb[14].mxu0  ;;  %v499_v54 = vsel %vm1374_vm5, %v349_v31, %v487_v50  ;;  %v851_v41 = vld [vmem:[%s1460_s4] ss:$0 sm:$0xff] }
 0x115   :  { %v500_v55 = vsel %vm1374_vm5, %v351_v33, %v488_v16  ;;  %v482_v57 = vrot.slane %v361_v53, 1  ;;  %v363_v60 = vpop.f32.mrb[15].mxu0  ;;  %v507_v61 = vadd.f32 %v499_v54, %v1334_v56 }
 0x116   :  { %1026 = vpow2.f32 %v517_v51  ;;  %v1392_v62 = vadd.f32 %v500_v55, %v1338_v58  ;;  %v483_v63 = vrot.slane %v363_v60, 1 }
 0x117   :  { %v485_v1 = vsel %vm484_vm4, %v480_v45, %v482_v57  ;;  %v491_v2 = vsel %vm484_vm4, %v482_v57, %v476_v34  ;;  %v514_v4 = vsub.f32 0.0, %v507_v61 }
 0x118   :  { %v503_v5 = vsel %vm1386_vm6, %v361_v53, %v491_v2  ;;  %v486_v6 = vsel %vm484_vm4, %v481_v49, %v483_v63  ;;  %v492_v56 = vsel %vm484_vm4, %v483_v63, %v477_v40  ;;  %v509_v7 = vadd.f32 %v485_v1, %v472_v9 }
 0x119   :  { %v511_v58 = vadd.f32 %v503_v5, %v474_v27  ;;  %v504_v8 = vsel %vm1386_vm6, %v363_v60, %v492_v56  ;;  %v1406_v10 = vadd.f32 %v486_v6, %v473_v14  ;;  %v519_v11 = vmul.f32 1.442695, %v514_v4 }
 0x11a   :  { %v1408_v12 = vadd.f32 %v504_v8, %v475_v30  ;;  %v515_v13 = vsub.f32 0.0, %v509_v7 }
 0x11b   :  { %v516_v17 = vsub.f32 0.0, %v511_v58  ;;  %1028 = vpow2.f32 %v519_v11 }
 0x11c   :  { %v521_v19 = vmul.f32 1.442695, %v515_v13 }
 0x11d   :  { %v523_v20 = vmul.f32 1.442695, %v516_v17 }
 0x11e   :  { %1030 = vpow2.f32 %v521_v19 }
 0x11f   :  { %1032 = vpow2.f32 %v523_v20 }
 0x120   :  { %v1027_v21 = vpop.eup %1026 }
 0x121   :  { %v525_v22 = vadd.f32 1.0, %v1027_v21 }
 0x123   :  { %1034 = vrcp.f32 %v525_v22 }
 0x125   :  { %v1029_v9 = vpop.eup %1028 }
 0x126   :  { %v526_v23 = vadd.f32 1.0, %v1029_v9 }
 0x128   :  { %v1031_v24 = vpop.eup %1030  ;;  %1036 = vrcp.f32 %v526_v23 }
 0x129   :  { %v1033_v25 = vpop.eup %1032  ;;  %v527_v14 = vadd.f32 1.0, %v1031_v24 }
 0x12a   :  { %v528_v26 = vadd.f32 1.0, %v1033_v25 }
 0x12b   :  { %1038 = vrcp.f32 %v527_v14 }
 0x12c   :  { %1040 = vrcp.f32 %v528_v26 }
 0x12d   :  { %v1035_v27 = vpop.eup %1034 }
 0x12e   :  { %v533_v28 = vmul.f32 %v1035_v27, %v505_v43 }
 0x130   :  { %650 = vmatmul.mubr.f32.vlgmr.msra.gmra.mrb[8].mxu1 %v533_v28  ;;  %904 = vmatprep.mubr.f32.mxu0 %v533_v28 }
 0x131   :  { %655 = vmatprep.mubr.f32.mxu1 %v1085_v0 }
 0x132   :  { %v1037_v29 = vpop.eup %1036 }
 0x133   :  { %v534_v30 = vmul.f32 %v1037_v29, %v507_v61 }
 0x135   :  { %v1039_v31 = vpop.eup %1038  ;;  %656 = vmatmul.mubr.f32.gmra.mrb[10].mxu1 %v534_v30  ;;  %905 = vmatmul.mubr.f32.vlgmr.msra.gmra.mrb[16].mxu0 %v534_v30 }
 0x136   :  { %v1041_v32 = vpop.eup %1040  ;;  %661 = vmatprep.mubr.f32.mxu1 %v1085_v0  ;;  %v535_v34 = vmul.f32 %v1039_v31, %v509_v7 }
 0x137   :  { %v536_v36 = vmul.f32 %v1041_v32, %v511_v58 }
 0x138   :  { %907 = vmatprep.mubr.f32.mxu0 %v535_v34 }
 0x139   :  { %662 = vmatmul.mubr.f32.gmra.mrb[12].mxu1 %v535_v34  ;;  %908 = vmatmul.mubr.f32.gmra.mrb[18].mxu0 %v536_v36 }
 0x13a   :  { %667 = vmatprep.mubr.f32.mxu1 %v1085_v0 }
 0x13d   :  { %668 = vmatmul.mubr.f32.gmra.mrb[14].mxu1 %v536_v36 }
 0x203   :  { %v651_v33 = vpop.f32.mrb[8].mxu1 }
 0x204   :  { %v653_v38 = vpop.f32.mrb[9].mxu1  ;;  %v760_v42 = vrot.slane %v651_v33, 7 }
 0x208   :  { %v657_v39 = vpop.f32.mrb[10].mxu1  ;;  %v906_v40 = vpop.f32.mrb[16].mxu0 }
 0x209   :  { %v761_v43 = vrot.slane %v657_v39, 7  ;;  %v787_v18 = vrot.slane %v906_v40, 1  ;;  %v659_v35 = vpop.f32.mrb[11].mxu1  ;;  %v740_v45 = vpop.f32.mrb[17].mxu0 }
 0x20a   :  { %v786_v37 = vrot.slane %v740_v45, 1 }
 0x20b   :  { %v766_v47 = vsel %vm428_vm1, %v760_v42, %v761_v43 }
 0x20c   :  { %v779_v48 = vadd.f32 %v851_v41, %v766_v47  ;;  %v792_v0 = vsel %vm484_vm4, %v786_v37, %v787_v18  ;;  %v663_v49 = vpop.f32.mrb[12].mxu1  ;;  %v909_v50 = vpop.f32.mrb[18].mxu0 }
 0x20d   :  { %v762_v51 = vrot.slane %v663_v49, 7  ;;  %v789_v16 = vrot.slane %v909_v50, 1  ;;  %v665_v53 = vpop.f32.mrb[13].mxu1  ;;  %v750_v54 = vpop.f32.mrb[19].mxu0 }
 0x20e   :  { %v783_v55 = vadd.f32 %v779_v48, %v659_v35  ;;  %v788_v57 = vrot.slane %v750_v54, 1 }
 0x20f   :  { %v765_v60 = vsel %vm428_vm1, %v761_v43, %v762_v51  ;;  %v793_v61 = vsel %vm484_vm4, %v789_v16, %v786_v37 }
 0x210   :  { %v770_v63 = vsel %vm1328_vm2, %v663_v49, %v765_v60  ;;  %v797_v1 = vsel %vm1386_vm6, %v909_v50, %v793_v61  ;;  %v790_v2 = vsel %vm484_vm4, %v788_v57, %v789_v16  ;;  %v791_v4 = vsel %vm484_vm4, %v787_v18, %v788_v57  ;;  %v669_v5 = vpop.f32.mrb[14].mxu1 }
 0x211   :  { %v780_v6 = vadd.f32 %v851_v41, %v770_v63  ;;  %v795_v56 = vsel %vm1374_vm5, %v906_v40, %v791_v4  ;;  %v763_v7 = vrot.slane %v669_v5, 7  ;;  %v671_v58 = vpop.f32.mrb[15].mxu1 }
 0x212   :  { %v799_v8 = vadd.f32 %v795_v56, %v783_v55 }
 0x213   :  { %v784_v11 = vadd.f32 %v780_v6, %v665_v53  ;;  %v767_v52 = vsel %vm428_vm1, %v763_v7, %v760_v42  ;;  %v764_v59 = vsel %vm428_vm1, %v762_v51, %v763_v7 }
 0x214   :  { %v803_v13 = vsub.f32 0.0, %v799_v8  ;;  %v768_v17 = vsel %vm1346_vm3, %v651_v33, %v767_v52  ;;  %v781_v19 = vadd.f32 %v851_v41, %v764_v59 }
 0x215   :  { %v800_v20 = vadd.f32 %v790_v2, %v784_v11  ;;  %v778_v21 = vadd.f32 %v851_v41, %v768_v17 }
 0x216   :  { %v808_v22 = vmul.f32 1.442695, %v803_v13  ;;  %v785_v46 = vadd.f32 %v781_v19, %v671_v58 }
 0x217   :  { %v804_v9 = vsub.f32 0.0, %v800_v20  ;;  %v782_v23 = vadd.f32 %v778_v21, %v653_v38 }
 0x218   :  { %1042 = vpow2.f32 %v808_v22  ;;  %v801_v24 = vadd.f32 %v797_v1, %v785_v46 }
 0x219   :  { %v810_v25 = vmul.f32 1.442695, %v804_v9  ;;  %v798_v14 = vadd.f32 %v792_v0, %v782_v23 }
 0x21a   :  { %v805_v26 = vsub.f32 0.0, %v801_v24 }
 0x21b   :  { %1044 = vpow2.f32 %v810_v25  ;;  %v802_v27 = vsub.f32 0.0, %v798_v14 }
 0x21c   :  { %v812_v15 = vmul.f32 1.442695, %v805_v26 }
 0x21d   :  { %v806_v28 = vmul.f32 1.442695, %v802_v27 }
 0x21e   :  { %1046 = vpow2.f32 %v812_v15 }
 0x21f   :  { %1048 = vpow2.f32 %v806_v28 }
 0x222   :  { %v1043_v3 = vpop.eup %1042 }
 0x223   :  { %v815_v29 = vadd.f32 1.0, %v1043_v3 }
 0x225   :  { %v1045_v30 = vpop.eup %1044  ;;  %1050 = vrcp.f32 %v815_v29 }
 0x226   :  { %v816_v31 = vadd.f32 1.0, %v1045_v30 }
 0x228   :  { %v1047_v32 = vpop.eup %1046  ;;  %1052 = vrcp.f32 %v816_v31 }
 0x229   :  { %v1049_v34 = vpop.eup %1048  ;;  %v817_v36 = vadd.f32 1.0, %v1047_v32 }
 0x22a   :  { %v814_v33 = vadd.f32 1.0, %v1049_v34 }
 0x22b   :  { %1054 = vrcp.f32 %v817_v36 }
 0x22c   :  { %1056 = vrcp.f32 %v814_v33 }
 0x22f   :  { %v1051_v38 = vpop.eup %1050 }
 0x230   :  { %v823_v39 = vmul.f32 %v1051_v38, %v799_v8 }
 0x232   :  { %v1053_v40 = vpop.eup %1052  ;;  %v827_v41 = vadd.f32 %v823_v39, %v1392_v62 }
 0x233   :  { %v824_v42 = vmul.f32 %v1053_v40, %v800_v20 }
 0x234   :  { %831 = vst [vmem:[%s1461_s5 + $0x8] sm:$0xff] %v827_v41 }
 0x235   :  { %v1055_v43 = vpop.eup %1054  ;;  %v828_v18 = vadd.f32 %v824_v42, %v1406_v10 }
 0x236   :  { %v1057_v35 = vpop.eup %1056  ;;  %v825_v45 = vmul.f32 %v1055_v43, %v801_v24 }
 0x237   :  { %832 = vst [vmem:[%s1461_s5 + $0x10] sm:$0xff] %v828_v18  ;;  %v822_v37 = vmul.f32 %v1057_v35, %v798_v14 }
 0x238   :  { %v829_v47 = vadd.f32 %v825_v45, %v1408_v12 }
 0x239   :  { %v826_v48 = vadd.f32 %v822_v37, %v1372_v44 }
 0x23a   :  { %833 = vst [vmem:[%s1461_s5 + $0x18] sm:$0xff] %v829_v47 }
 0x23b   :  { %830 = vst [vmem:[%s1461_s5] sm:$0xff] %v826_v48 }
 0x23c   :  { %838 = vsyncpa [#allocation3], 1 }

</bundles_post_ra>
